<compile_context>
chip_gen: v7x
topology: tpu7x:2x2x1
jax: 0.10.0
libtpu: 0.0.40
codegen_flags: <defaults>
</compile_context>

<pallas_src>
import functools

import jax
import jax.numpy as jnp
from jax.experimental import pallas as pl
from jax.experimental.pallas import tpu as pltpu


# --------------------------------------------------------------------------- #
# helpers
# --------------------------------------------------------------------------- #
def _pick_row_tile(Ho, Wo):
    """Largest divisor of Ho such that tho*Wo targets ~256 matmul rows."""
    cap = max(1, min(Ho, -(-256 // Wo)))
    for t in range(cap, 0, -1):
        if Ho % t == 0:
            return t
    return 1


def _pick_col_tile(cout, cap=512):
    """Cout chunk for the epilogue: <= cap lanes, 128-aligned when possible."""
    if cout <= cap:
        return cout
    for t in range(cap, 0, -1):
        if cout % t == 0 and t % 128 == 0:
            return t
    return cout


def _vmem_limit_bytes():
    """Per-chip VMEM budget with headroom for compiler internal scratch."""
    try:
        cap = int(pltpu.get_tpu_info().vmem_capacity_bytes)
    except Exception:
        cap = 64 * 1024 * 1024
    return max(32 * 1024 * 1024, min(int(cap * 3 // 4), 100 * 1024 * 1024))


def _const_spec(shape):
    """BlockSpec for a grid-constant (weight/bias) input: single-buffered."""
    n = len(shape)

    def idx(*args, _n=n):
        return (0,) * _n

    try:
        return pl.BlockSpec(shape, idx, pipeline_mode=pl.Buffered(1))
    except Exception:  # older jax without pipeline_mode / Buffered
        return pl.BlockSpec(shape, idx)


# --------------------------------------------------------------------------- #
# kernel
# --------------------------------------------------------------------------- #
def _bottleneck_kernel(*refs, stride, has_proj, tho, conv2_split, tc):
    if has_proj:
        (x_ref, w1_ref, b1_ref, w2_ref, b2_ref, w3_ref, b3_ref,
         wsc_ref, bsc_ref, o_ref, pad_ref) = refs
    else:
        (x_ref, w1_ref, b1_ref, w2_ref, b2_ref, w3_ref, b3_ref,
         o_ref, pad_ref) = refs

    _, H, W, Cin = x_ref.shape
    P = w1_ref.shape[1]
    Cout = w3_ref.shape[1]
    Wo = (W - 1) // stride + 1
    pdtype = pad_ref.dtype

    prows = (tho - 1) * stride + 3      # padded input rows this block reads
    srows = (tho - 1) * stride + 1      # unstrided row span of the output tile
    nread = min(prows, H)               # conv1 rows computed per block
    M = tho * Wo

    j = pl.program_id(1)
    ro = pl.multiple_of(j * tho, tho)                # first output row
    ps = pl.multiple_of(ro * stride, tho * stride)   # first padded input row

    # ---- zero only the halo cells this block will read ---------------------
    pad_ref[pl.ds(ps, prows), 0:8, :] = jnp.zeros((prows, 8, P), pdtype)
    pad_ref[pl.ds(ps, prows), W + 8:W + 9, :] = jnp.zeros((prows, 1, P), pdtype)

    @pl.when(ro == 0)
    def _():
        pad_ref[0:1, :, :] = jnp.zeros((1, W + 9, P), pdtype)

    @pl.when(ps + prows >= H + 2)
    def _():
        pad_ref[H + 1:H + 2, :, :] = jnp.zeros((1, W + 9, P), pdtype)

    # ---- conv1 (1x1, BN scale folded) + shift + ReLU ------------------------
    # Covers every conv1 row this block needs (incl. the 3x3 halo); boundary
    # blocks recompute up to 2 rows owned by their neighbours (harmless).
    rs = jnp.clip(ps - 1, 0, H - nread)
    xin = x_ref[0, pl.ds(rs, nread), :, :]                     # (nread, W, Cin)
    h1 = jnp.dot(xin.reshape(nread * W, Cin), w1_ref[...],
                 preferred_element_type=jnp.float32)
    h1 = jnp.maximum(h1 + b1_ref[...], 0.0)
    pad_ref[pl.ds(rs + 1, nread), 8:W + 8, :] = (               # sublane-aligned
        h1.reshape(nread, W, P).astype(pdtype))

    # ---- conv2 (3x3, stride) + shift + ReLU ---------------------------------
    ptile = pad_ref[pl.ds(ps, prows), :, :]                     # (prows, W+9, P)

    def tap(kh, kw):
        if stride == 1:
            return ptile[kh:kh + tho, 7 + kw:7 + kw + Wo, :]
        return jax.lax.slice(
            ptile, (kh, 7 + kw, 0),
            (kh + srows, 7 + kw + (Wo - 1) * stride + 1, P),
            (stride, stride, 1))                                # (tho, Wo, P)

    acc = None
    if conv2_split:
        # P multiple of 128: nine accumulating K=P dots, no lane-concat copies.
        for kh in range(3):
            for kw in range(3):
                d = jnp.dot(tap(kh, kw).reshape(M, P),
                            w2_ref[kh, kw * P:(kw + 1) * P, :],
                            preferred_element_type=jnp.float32)
                acc = d if acc is None else acc + d
    else:
        # Small P: fold the three kw taps into the contraction dim (K = 3P).
        for kh in range(3):
            patch = jnp.concatenate([tap(kh, 0), tap(kh, 1), tap(kh, 2)],
                                    axis=-1)                    # (tho, Wo, 3P)
            d = jnp.dot(patch.reshape(M, 3 * P), w2_ref[kh],
                        preferred_element_type=jnp.float32)
            acc = d if acc is None else acc + d
    h2 = jnp.maximum(acc + b2_ref[...], 0.0).astype(pdtype)     # (M, P)

    # ---- shortcut input ------------------------------------------------------
    if has_proj:
        if stride == 1:
            xs = x_ref[0, pl.ds(ro, tho), :, :]
        else:
            xt = x_ref[0, pl.ds(ps, srows), :, :]
            xs = jax.lax.slice(xt, (0, 0, 0),
                               (srows, (Wo - 1) * stride + 1, Cin),
                               (stride, stride, 1))             # (tho, Wo, Cin)
        xs = xs.reshape(M, Cin)
    else:  # identity shortcut: stride == 1 and Cin == Cout
        xs = x_ref[0, pl.ds(ro, tho), :, :].reshape(M, Cout)

    # ---- conv3 (1x1) + bn3 shift + shortcut + ReLU, Cout-chunked ------------
    for c in range(0, Cout, tc):
        h3 = jnp.dot(h2, w3_ref[:, c:c + tc],
                     preferred_element_type=jnp.float32) + b3_ref[:, c:c + tc]
        if has_proj:
            sc = (jnp.dot(xs, wsc_ref[:, c:c + tc],
                          preferred_element_type=jnp.float32)
                  + bsc_ref[:, c:c + tc])
        else:
            sc = xs[:, c:c + tc].astype(jnp.float32)
        out = jnp.maximum(h3 + sc, 0.0).reshape(tho, Wo, tc)
        o_ref[0, :, :, c:c + tc] = out.astype(o_ref.dtype)


# --------------------------------------------------------------------------- #
# wrappers
# --------------------------------------------------------------------------- #
def bottleneck_forward_nhwc(x_nhwc, params, stride, out_dtype=jnp.bfloat16,
                            row_tile=None):
    """Bottleneck forward, NHWC activations, bf16 datapath, f32 accumulation."""
    x = x_nhwc.astype(jnp.bfloat16)
    N, H, W, Cin = x.shape
    P = params["w1"].shape[1]
    Cout = params["w3"].shape[1]
    Ho = (H - 1) // stride + 1
    Wo = (W - 1) // stride + 1
    has_proj = "wsc" in params
    if not has_proj:
        assert stride == 1 and Cin == Cout, (
            "identity shortcut requires stride==1 and in_planes == expansion*planes")

    tho = row_tile if row_tile is not None else _pick_row_tile(Ho, Wo)
    assert Ho % tho == 0, (Ho, tho)
    n_row_blocks = Ho // tho
    conv2_split = (P % 128 == 0)
    tc = _pick_col_tile(Cout)

    w1 = params["w1"].astype(jnp.bfloat16)
    w2 = params["w2"].astype(jnp.bfloat16)           # (3, 3P, P) kh-slabs
    w3 = params["w3"].astype(jnp.bfloat16)
    b1, b2, b3 = params["b1"], params["b2"], params["b3"]

    in_specs = [
        pl.BlockSpec((1, H, W, Cin), lambda b, j: (b, 0, 0, 0)),
        _const_spec((Cin, P)), _const_spec((1, P)),
        _const_spec((3, 3 * P, P)), _const_spec((1, P)),
        _const_spec((P, Cout)), _const_spec((1, Cout)),
    ]
    args = [x, w1, b1, w2, b2, w3, b3]
    if has_proj:
        in_specs += [_const_spec((Cin, Cout)), _const_spec((1, Cout))]
        args += [params["wsc"].astype(jnp.bfloat16), params["bsc"]]

    out = pl.pallas_call(
        functools.partial(_bottleneck_kernel, stride=stride, has_proj=has_proj,
                          tho=tho, conv2_split=conv2_split, tc=tc),
        out_shape=jax.ShapeDtypeStruct((N, Ho, Wo, Cout), out_dtype),
        grid_spec=pltpu.PrefetchScalarGridSpec(
            num_scalar_prefetch=0,
            grid=(N, n_row_blocks),
            in_specs=in_specs,
            out_specs=pl.BlockSpec((1, tho, Wo, Cout),
                                   lambda b, j: (b, j, 0, 0)),
            scratch_shapes=[pltpu.VMEM((H + 2, W + 9, P), jnp.bfloat16)]),
        compiler_params=pltpu.CompilerParams(
            dimension_semantics=("parallel", "parallel"),
            vmem_limit_bytes=_vmem_limit_bytes()),
    )(*args)
    return out


def bottleneck_forward(x_nchw, params, stride, row_tile=None):
    """PyTorch-parity entry: NCHW f32 in -> NCHW f32 out.

    For chained blocks prefer bottleneck_forward_nhwc (NHWC bf16 in/out) so the
    per-block layout/dtype passes over HBM are not paid.
    """
    x = jnp.transpose(x_nchw, (0, 2, 3, 1))
    out = bottleneck_forward_nhwc(x, params, stride, out_dtype=jnp.bfloat16,
                                  row_tile=row_tile)
    return jnp.transpose(out.astype(jnp.float32), (0, 3, 1, 2))


# --------------------------- parameter construction ------------------------- #
def init_params(key, in_planes, planes, stride, expansion=4):
    """Eval-mode params with BN scale folded into conv weights; shifts kept."""
    cout = expansion * planes
    eps = 1e-5
    ks = list(jax.random.split(key, 8))

    def conv_w(k, co, ci, kh, kw):
        fan_in = ci * kh * kw
        return jax.random.normal(k, (co, ci, kh, kw), jnp.float32) / jnp.sqrt(fan_in)

    def bn(k, c):
        k1, k2, k3, k4 = jax.random.split(k, 4)
        gamma = 0.5 + jax.random.uniform(k1, (c,), jnp.float32)
        beta = 0.1 * jax.random.normal(k2, (c,), jnp.float32)
        mean = 0.1 * jax.random.normal(k3, (c,), jnp.float32)
        var = 0.5 + jax.random.uniform(k4, (c,), jnp.float32)
        scale = gamma / jnp.sqrt(var + eps)
        shift = beta - mean * scale
        return scale, shift

    p = {}
    # conv1: OIHW (P, Cin, 1, 1) -> (Cin, P), fold BN1 scale into out channels.
    w1 = conv_w(ks[0], planes, in_planes, 1, 1)[:, :, 0, 0].T
    s1, b1 = bn(ks[1], planes)
    p["w1"] = w1 * s1[None, :]
    p["b1"] = b1.reshape(1, planes)
    # conv2: OIHW (P, P, 3, 3) -> HWIO (3, 3, P, P), fold BN2 scale.
    w2 = jnp.transpose(conv_w(ks[2], planes, planes, 3, 3), (2, 3, 1, 0))
    s2, b2 = bn(ks[3], planes)
    p["w2_hwio"] = w2 * s2[None, None, None, :]
    # per-kh slab: rows ordered (kw, cin) -> matches the kernel's kw handling.
    p["w2"] = p["w2_hwio"].reshape(3, 3 * planes, planes)
    p["b2"] = b2.reshape(1, planes)
    # conv3: (Cout, P, 1, 1) -> (P, Cout), fold BN3 scale.
    w3 = conv_w(ks[4], cout, planes, 1, 1)[:, :, 0, 0].T
    s3, b3 = bn(ks[5], cout)
    p["w3"] = w3 * s3[None, :]
    p["b3"] = b3.reshape(1, cout)
    if stride != 1 or in_planes != cout:
        wsc = conv_w(ks[6], cout, in_planes, 1, 1)[:, :, 0, 0].T
        ssc, bsc = bn(ks[7], cout)
        p["wsc"] = wsc * ssc[None, :]
        p["bsc"] = bsc.reshape(1, cout)
    return p


# --------------------------- pure-JAX reference ------------------------------ #
def ref_forward(x_nchw, params, stride):
    """f32 reference on the same bf16-rounded inputs/weights the kernel sees."""
    x = jnp.transpose(x_nchw, (0, 2, 3, 1))
    x = x.astype(jnp.bfloat16).astype(jnp.float32)

    def bf(w):
        return w.astype(jnp.bfloat16).astype(jnp.float32)

    def conv(h, w_hwio, s, pad):
        return jax.lax.conv_general_dilated(
            h, w_hwio, (s, s), [(pad, pad), (pad, pad)],
            dimension_numbers=("NHWC", "HWIO", "NHWC"))

    h = jnp.maximum(conv(x, bf(params["w1"])[None, None], 1, 0) + params["b1"], 0.0)
    h = jnp.maximum(conv(h, bf(params["w2_hwio"]), stride, 1) + params["b2"], 0.0)
    h = conv(h, bf(params["w3"])[None, None], 1, 0) + params["b3"]
    if "wsc" in params:
        sc = conv(x, bf(params["wsc"])[None, None], stride, 0) + params["bsc"]
    else:
        sc = x
    out = jnp.maximum(h + sc, 0.0)
    return jnp.transpose(out, (0, 3, 1, 2))


if __name__ == "__main__":
    key = jax.random.PRNGKey(0)

    cases = [
        # (name, N, H, W, in_planes, planes, stride, row_tile)
        ("proj_s1",     2, 16, 16,  8,   4, 1, 4),    # projection, multi row blocks
        ("proj_s2",     2, 16, 16,  8,   4, 2, 2),    # stride-2 downsample block
        ("identity_s1", 1, 16, 16, 16,   4, 1, None), # identity shortcut
        ("proj_p128",   1,  8,  8, 64, 128, 1, None), # P%128==0 -> split conv2 path
    ]
    for name, N, H, W, in_planes, planes, stride, row_tile in cases:
        key, kx, kp = jax.random.split(key, 3)
        x = jax.random.normal(kx, (N, in_planes, H, W), jnp.float32)
        params = init_params(kp, in_planes, planes, stride)

        out = jax.block_until_ready(
            bottleneck_forward(x, params, stride, row_tile=row_tile))

        Ho = (H - 1) // stride + 1
        Wo = (W - 1) // stride + 1
        assert out.shape == (N, 4 * planes, Ho, Wo), (name, out.shape)

        ref = ref_forward(x, params, stride)
        err = float(jnp.max(jnp.abs(out - ref)))
        scale = float(jnp.max(jnp.abs(ref)))
        assert err <= 3e-2 * max(scale, 1.0), (
            f"{name}: max abs error {err} (scale {scale})")

    print("KERNEL_OK")
</pallas_src>

<mosaic_0001>
module attributes {stable_mosaic.version = 11 : i64} {
  func.func @_bottleneck_kernel(%arg0: i32, %arg1: i32, %arg2: memref<1x16x16x8xbf16, #tpu.memory_space<vmem>>, %arg3: memref<8x4xbf16, #tpu.memory_space<vmem>>, %arg4: memref<1x4xf32, #tpu.memory_space<vmem>>, %arg5: memref<3x12x4xbf16, #tpu.memory_space<vmem>>, %arg6: memref<1x4xf32, #tpu.memory_space<vmem>>, %arg7: memref<4x16xbf16, #tpu.memory_space<vmem>>, %arg8: memref<1x16xf32, #tpu.memory_space<vmem>>, %arg9: memref<8x16xbf16, #tpu.memory_space<vmem>>, %arg10: memref<1x16xf32, #tpu.memory_space<vmem>>, %arg11: memref<1x4x16x16xbf16, #tpu.memory_space<vmem>>, %arg12: memref<18x25x4xbf16, #tpu.memory_space<vmem>>) attributes {dimension_semantics = [#tpu.dimension_semantics<parallel>, #tpu.dimension_semantics<parallel>], iteration_bounds = array<i64: 2, 4>, scalar_prefetch = 0 : i64, scratch_operands = 1 : i64, tpu.core_type = #tpu.core_type<tc>, window_params = [{transform_indices = @transform_0, window_bounds = array<i64: 1, 16, 16, 8>}, {pipeline_mode = #tpu.pipeline_mode<synchronous>, transform_indices = @transform_1, window_bounds = array<i64: 8, 4>}, {pipeline_mode = #tpu.pipeline_mode<synchronous>, transform_indices = @transform_2, window_bounds = array<i64: 1, 4>}, {pipeline_mode = #tpu.pipeline_mode<synchronous>, transform_indices = @transform_3, window_bounds = array<i64: 3, 12, 4>}, {pipeline_mode = #tpu.pipeline_mode<synchronous>, transform_indices = @transform_4, window_bounds = array<i64: 1, 4>}, {pipeline_mode = #tpu.pipeline_mode<synchronous>, transform_indices = @transform_5, window_bounds = array<i64: 4, 16>}, {pipeline_mode = #tpu.pipeline_mode<synchronous>, transform_indices = @transform_6, window_bounds = array<i64: 1, 16>}, {pipeline_mode = #tpu.pipeline_mode<synchronous>, transform_indices = @transform_7, window_bounds = array<i64: 8, 16>}, {pipeline_mode = #tpu.pipeline_mode<synchronous>, transform_indices = @transform_8, window_bounds = array<i64: 1, 16>}, {transform_indices = @transform_9, window_bounds = array<i64: 1, 4, 16, 16>}]} {
    %c4_i32 = arith.constant 4 : i32
    %0 = arith.muli %arg1, %c4_i32 : i32
    %1 = tpu.assume_multiple %0, 4 : i32
    %c1_i32 = arith.constant 1 : i32
    %2 = arith.muli %1, %c1_i32 : i32
    %3 = tpu.assume_multiple %2, 4 : i32
    %cst = arith.constant 0.000000e+00 : bf16
    %4 = vector.broadcast %cst : bf16 to vector<6x8x4xbf16>
    %5 = arith.index_cast %3 : i32 to index
    %c0 = arith.constant 0 : index
    %c0_0 = arith.constant 0 : index
    %6 = vector.load %arg12[%5, %c0, %c0_0] : memref<18x25x4xbf16, #tpu.memory_space<vmem>>, vector<6x8x4xbf16>
    tpu.vector_store %arg12[%5, %c0, %c0_0], %4 {strides = array<i32>} : memref<18x25x4xbf16, #tpu.memory_space<vmem>>, vector<6x8x4xbf16>,
    %cst_1 = arith.constant 0.000000e+00 : bf16
    %7 = vector.broadcast %cst_1 : bf16 to vector<6x1x4xbf16>
    %8 = arith.index_cast %3 : i32 to index
    %c24 = arith.constant 24 : index
    %c0_2 = arith.constant 0 : index
    %9 = vector.load %arg12[%8, %c24, %c0_2] : memref<18x25x4xbf16, #tpu.memory_space<vmem>>, vector<6x1x4xbf16>
    tpu.vector_store %arg12[%8, %c24, %c0_2], %7 {strides = array<i32>} : memref<18x25x4xbf16, #tpu.memory_space<vmem>>, vector<6x1x4xbf16>,
    %c0_i32 = arith.constant 0 : i32
    %10 = arith.cmpi eq, %1, %c0_i32 : i32
    %11 = arith.extui %10 : i1 to i32
    %c0_i32_3 = arith.constant 0 : i32
    %12 = arith.cmpi ne, %11, %c0_i32_3 : i32
    scf.if %12 {
      %cst_51 = arith.constant 0.000000e+00 : bf16
      %92 = vector.broadcast %cst_51 : bf16 to vector<1x25x4xbf16>
      %c0_52 = arith.constant 0 : index
      %c0_53 = arith.constant 0 : index
      %c0_54 = arith.constant 0 : index
      %93 = vector.load %arg12[%c0_52, %c0_53, %c0_54] : memref<18x25x4xbf16, #tpu.memory_space<vmem>>, vector<1x25x4xbf16>
      tpu.vector_store %arg12[%c0_52, %c0_53, %c0_54], %92 {strides = array<i32>} : memref<18x25x4xbf16, #tpu.memory_space<vmem>>, vector<1x25x4xbf16>,
    } else {
    }
    %c6_i32 = arith.constant 6 : i32
    %13 = arith.addi %3, %c6_i32 : i32
    %c18_i32 = arith.constant 18 : i32
    %14 = arith.cmpi sge, %13, %c18_i32 : i32
    %15 = arith.extui %14 : i1 to i32
    %c0_i32_4 = arith.constant 0 : i32
    %16 = arith.cmpi ne, %15, %c0_i32_4 : i32
    scf.if %16 {
      %cst_51 = arith.constant 0.000000e+00 : bf16
      %92 = vector.broadcast %cst_51 : bf16 to vector<1x25x4xbf16>
      %c17 = arith.constant 17 : index
      %c0_52 = arith.constant 0 : index
      %c0_53 = arith.constant 0 : index
      %93 = vector.load %arg12[%c17, %c0_52, %c0_53] : memref<18x25x4xbf16, #tpu.memory_space<vmem>>, vector<1x25x4xbf16>
      tpu.vector_store %arg12[%c17, %c0_52, %c0_53], %92 {strides = array<i32>} : memref<18x25x4xbf16, #tpu.memory_space<vmem>>, vector<1x25x4xbf16>,
    } else {
    }
    %c1_i32_5 = arith.constant 1 : i32
    %17 = arith.subi %3, %c1_i32_5 : i32
    %c0_i32_6 = arith.constant 0 : i32
    %c10_i32 = arith.constant 10 : i32
    %18 = arith.maxsi %c0_i32_6, %17 : i32
    %19 = arith.minsi %c10_i32, %18 : i32
    %c0_7 = arith.constant 0 : index
    %20 = arith.index_cast %19 : i32 to index
    %c0_8 = arith.constant 0 : index
    %c0_9 = arith.constant 0 : index
    %21 = vector.load %arg2[%c0_7, %20, %c0_8, %c0_9] : memref<1x16x16x8xbf16, #tpu.memory_space<vmem>>, vector<1x6x16x8xbf16>
    %22 = vector.shape_cast %21 : vector<1x6x16x8xbf16> to vector<6x16x8xbf16>
    %23 = vector.shape_cast %22 : vector<6x16x8xbf16> to vector<96x8xbf16>
    %c0_10 = arith.constant 0 : index
    %c0_11 = arith.constant 0 : index
    %24 = vector.load %arg3[%c0_10, %c0_11] : memref<8x4xbf16, #tpu.memory_space<vmem>>, vector<8x4xbf16>
    %cst_12 = arith.constant dense<0.000000e+00> : vector<96x4xf32>
    %25 = tpu.matmul %23, %24, %cst_12 {dimension_numbers = #tpu.dot_dimension_numbers<[1], [0], [0], [1], [0, 0, 1, 1], [], []>} : vector<96x8xbf16>, vector<8x4xbf16>, vector<96x4xf32> -> vector<96x4xf32>
    %c0_13 = arith.constant 0 : index
    %c0_14 = arith.constant 0 : index
    %26 = vector.load %arg4[%c0_13, %c0_14] : memref<1x4xf32, #tpu.memory_space<vmem>>, vector<1x4xf32>
    %27 = vector.broadcast %26 : vector<1x4xf32> to vector<96x4xf32>
    %28 = arith.addf %25, %27 : vector<96x4xf32>
    %cst_15 = arith.constant 0.000000e+00 : f32
    %29 = vector.broadcast %cst_15 : f32 to vector<96x4xf32>
    %30 = arith.maximumf %28, %29 : vector<96x4xf32>
    %31 = vector.shape_cast %30 : vector<96x4xf32> to vector<6x16x4xf32>
    %32 = arith.truncf %31 : vector<6x16x4xf32> to vector<6x16x4xbf16>
    %c1_i32_16 = arith.constant 1 : i32
    %33 = arith.addi %19, %c1_i32_16 : i32
    %34 = arith.index_cast %33 : i32 to index
    %c8 = arith.constant 8 : index
    %c0_17 = arith.constant 0 : index
    %35 = vector.load %arg12[%34, %c8, %c0_17] : memref<18x25x4xbf16, #tpu.memory_space<vmem>>, vector<6x16x4xbf16>
    tpu.vector_store %arg12[%34, %c8, %c0_17], %32 {strides = array<i32>} : memref<18x25x4xbf16, #tpu.memory_space<vmem>>, vector<6x16x4xbf16>,
    %36 = arith.index_cast %3 : i32 to index
    %c0_18 = arith.constant 0 : index
    %c0_19 = arith.constant 0 : index
    %37 = vector.load %arg12[%36, %c0_18, %c0_19] : memref<18x25x4xbf16, #tpu.memory_space<vmem>>, vector<6x25x4xbf16>
    %38 = vector.extract_strided_slice %37 {offsets = [0, 7, 0], sizes = [4, 16, 4], strides = [1, 1, 1]} : vector<6x25x4xbf16> to vector<4x16x4xbf16>
    %39 = vector.extract_strided_slice %37 {offsets = [0, 8, 0], sizes = [4, 16, 4], strides = [1, 1, 1]} : vector<6x25x4xbf16> to vector<4x16x4xbf16>
    %40 = vector.extract_strided_slice %37 {offsets = [0, 9, 0], sizes = [4, 16, 4], strides = [1, 1, 1]} : vector<6x25x4xbf16> to vector<4x16x4xbf16>
    %41 = tpu.concatenate %38, %39, %40 in 2 : vector<4x16x4xbf16>, vector<4x16x4xbf16>, vector<4x16x4xbf16> -> vector<4x16x12xbf16>
    %42 = vector.shape_cast %41 : vector<4x16x12xbf16> to vector<64x12xbf16>
    %c0_20 = arith.constant 0 : index
    %c0_21 = arith.constant 0 : index
    %c0_22 = arith.constant 0 : index
    %43 = vector.load %arg5[%c0_20, %c0_21, %c0_22] : memref<3x12x4xbf16, #tpu.memory_space<vmem>>, vector<1x12x4xbf16>
    %44 = vector.shape_cast %43 : vector<1x12x4xbf16> to vector<12x4xbf16>
    %cst_23 = arith.constant dense<0.000000e+00> : vector<64x4xf32>
    %45 = tpu.matmul %42, %44, %cst_23 {dimension_numbers = #tpu.dot_dimension_numbers<[1], [0], [0], [1], [0, 0, 1, 1], [], []>} : vector<64x12xbf16>, vector<12x4xbf16>, vector<64x4xf32> -> vector<64x4xf32>
    %46 = vector.extract_strided_slice %37 {offsets = [1, 7, 0], sizes = [4, 16, 4], strides = [1, 1, 1]} : vector<6x25x4xbf16> to vector<4x16x4xbf16>
    %47 = vector.extract_strided_slice %37 {offsets = [1, 8, 0], sizes = [4, 16, 4], strides = [1, 1, 1]} : vector<6x25x4xbf16> to vector<4x16x4xbf16>
    %48 = vector.extract_strided_slice %37 {offsets = [1, 9, 0], sizes = [4, 16, 4], strides = [1, 1, 1]} : vector<6x25x4xbf16> to vector<4x16x4xbf16>
    %49 = tpu.concatenate %46, %47, %48 in 2 : vector<4x16x4xbf16>, vector<4x16x4xbf16>, vector<4x16x4xbf16> -> vector<4x16x12xbf16>
    %50 = vector.shape_cast %49 : vector<4x16x12xbf16> to vector<64x12xbf16>
    %c1 = arith.constant 1 : index
    %c0_24 = arith.constant 0 : index
    %c0_25 = arith.constant 0 : index
    %51 = vector.load %arg5[%c1, %c0_24, %c0_25] : memref<3x12x4xbf16, #tpu.memory_space<vmem>>, vector<1x12x4xbf16>
    %52 = vector.shape_cast %51 : vector<1x12x4xbf16> to vector<12x4xbf16>
    %cst_26 = arith.constant dense<0.000000e+00> : vector<64x4xf32>
    %53 = tpu.matmul %50, %52, %cst_26 {dimension_numbers = #tpu.dot_dimension_numbers<[1], [0], [0], [1], [0, 0, 1, 1], [], []>} : vector<64x12xbf16>, vector<12x4xbf16>, vector<64x4xf32> -> vector<64x4xf32>
    %54 = arith.addf %45, %53 : vector<64x4xf32>
    %55 = vector.extract_strided_slice %37 {offsets = [2, 7, 0], sizes = [4, 16, 4], strides = [1, 1, 1]} : vector<6x25x4xbf16> to vector<4x16x4xbf16>
    %56 = vector.extract_strided_slice %37 {offsets = [2, 8, 0], sizes = [4, 16, 4], strides = [1, 1, 1]} : vector<6x25x4xbf16> to vector<4x16x4xbf16>
    %57 = vector.extract_strided_slice %37 {offsets = [2, 9, 0], sizes = [4, 16, 4], strides = [1, 1, 1]} : vector<6x25x4xbf16> to vector<4x16x4xbf16>
    %58 = tpu.concatenate %55, %56, %57 in 2 : vector<4x16x4xbf16>, vector<4x16x4xbf16>, vector<4x16x4xbf16> -> vector<4x16x12xbf16>
    %59 = vector.shape_cast %58 : vector<4x16x12xbf16> to vector<64x12xbf16>
    %c2 = arith.constant 2 : index
    %c0_27 = arith.constant 0 : index
    %c0_28 = arith.constant 0 : index
    %60 = vector.load %arg5[%c2, %c0_27, %c0_28] : memref<3x12x4xbf16, #tpu.memory_space<vmem>>, vector<1x12x4xbf16>
    %61 = vector.shape_cast %60 : vector<1x12x4xbf16> to vector<12x4xbf16>
    %cst_29 = arith.constant dense<0.000000e+00> : vector<64x4xf32>
    %62 = tpu.matmul %59, %61, %cst_29 {dimension_numbers = #tpu.dot_dimension_numbers<[1], [0], [0], [1], [0, 0, 1, 1], [], []>} : vector<64x12xbf16>, vector<12x4xbf16>, vector<64x4xf32> -> vector<64x4xf32>
    %63 = arith.addf %54, %62 : vector<64x4xf32>
    %c0_30 = arith.constant 0 : index
    %c0_31 = arith.constant 0 : index
    %64 = vector.load %arg6[%c0_30, %c0_31] : memref<1x4xf32, #tpu.memory_space<vmem>>, vector<1x4xf32>
    %65 = vector.broadcast %64 : vector<1x4xf32> to vector<64x4xf32>
    %66 = arith.addf %63, %65 : vector<64x4xf32>
    %cst_32 = arith.constant 0.000000e+00 : f32
    %67 = vector.broadcast %cst_32 : f32 to vector<64x4xf32>
    %68 = arith.maximumf %66, %67 : vector<64x4xf32>
    %69 = arith.truncf %68 : vector<64x4xf32> to vector<64x4xbf16>
    %c0_33 = arith.constant 0 : index
    %70 = arith.index_cast %1 : i32 to index
    %c0_34 = arith.constant 0 : index
    %c0_35 = arith.constant 0 : index
    %71 = vector.load %arg2[%c0_33, %70, %c0_34, %c0_35] : memref<1x16x16x8xbf16, #tpu.memory_space<vmem>>, vector<1x4x16x8xbf16>
    %72 = vector.shape_cast %71 : vector<1x4x16x8xbf16> to vector<4x16x8xbf16>
    %73 = vector.shape_cast %72 : vector<4x16x8xbf16> to vector<64x8xbf16>
    %c0_36 = arith.constant 0 : index
    %c0_37 = arith.constant 0 : index
    %74 = vector.load %arg7[%c0_36, %c0_37] : memref<4x16xbf16, #tpu.memory_space<vmem>>, vector<4x16xbf16>
    %cst_38 = arith.constant dense<0.000000e+00> : vector<64x16xf32>
    %75 = tpu.matmul %69, %74, %cst_38 {dimension_numbers = #tpu.dot_dimension_numbers<[1], [0], [0], [1], [0, 0, 1, 1], [], []>} : vector<64x4xbf16>, vector<4x16xbf16>, vector<64x16xf32> -> vector<64x16xf32>
    %c0_39 = arith.constant 0 : index
    %c0_40 = arith.constant 0 : index
    %76 = vector.load %arg8[%c0_39, %c0_40] : memref<1x16xf32, #tpu.memory_space<vmem>>, vector<1x16xf32>
    %77 = vector.broadcast %76 : vector<1x16xf32> to vector<64x16xf32>
    %78 = arith.addf %75, %77 : vector<64x16xf32>
    %c0_41 = arith.constant 0 : index
    %c0_42 = arith.constant 0 : index
    %79 = vector.load %arg9[%c0_41, %c0_42] : memref<8x16xbf16, #tpu.memory_space<vmem>>, vector<8x16xbf16>
    %cst_43 = arith.constant dense<0.000000e+00> : vector<64x16xf32>
    %80 = tpu.matmul %73, %79, %cst_43 {dimension_numbers = #tpu.dot_dimension_numbers<[1], [0], [0], [1], [0, 0, 1, 1], [], []>} : vector<64x8xbf16>, vector<8x16xbf16>, vector<64x16xf32> -> vector<64x16xf32>
    %c0_44 = arith.constant 0 : index
    %c0_45 = arith.constant 0 : index
    %81 = vector.load %arg10[%c0_44, %c0_45] : memref<1x16xf32, #tpu.memory_space<vmem>>, vector<1x16xf32>
    %82 = vector.broadcast %81 : vector<1x16xf32> to vector<64x16xf32>
    %83 = arith.addf %80, %82 : vector<64x16xf32>
    %84 = arith.addf %78, %83 : vector<64x16xf32>
    %cst_46 = arith.constant 0.000000e+00 : f32
    %85 = vector.broadcast %cst_46 : f32 to vector<64x16xf32>
    %86 = arith.maximumf %84, %85 : vector<64x16xf32>
    %87 = vector.shape_cast %86 : vector<64x16xf32> to vector<4x16x16xf32>
    %88 = arith.truncf %87 : vector<4x16x16xf32> to vector<4x16x16xbf16>
    %c0_47 = arith.constant 0 : index
    %c0_48 = arith.constant 0 : index
    %c0_49 = arith.constant 0 : index
    %c0_50 = arith.constant 0 : index
    %89 = vector.load %arg11[%c0_47, %c0_48, %c0_49, %c0_50] : memref<1x4x16x16xbf16, #tpu.memory_space<vmem>>, vector<1x4x16x16xbf16>
    %90 = vector.shape_cast %89 : vector<1x4x16x16xbf16> to vector<4x16x16xbf16>
    %91 = vector.shape_cast %88 : vector<4x16x16xbf16> to vector<1x4x16x16xbf16>
    tpu.vector_store %arg11[%c0_47, %c0_48, %c0_49, %c0_50], %91 {strides = array<i32>} : memref<1x4x16x16xbf16, #tpu.memory_space<vmem>>, vector<1x4x16x16xbf16>,
    return
  }
  func.func @transform_0(%arg0: i32, %arg1: i32) -> (i32, i32, i32, i32) {
    %c0_i32 = arith.constant 0 : i32
    %c0_i32_0 = arith.constant 0 : i32
    %c0_i32_1 = arith.constant 0 : i32
    %c0_i32_2 = arith.constant 0 : i32
    return %arg0, %c0_i32, %c0_i32_0, %c0_i32_1 : i32, i32, i32, i32
  }
  func.func @transform_1(%arg0: i32, %arg1: i32) -> (i32, i32) {
    %c0_i32 = arith.constant 0 : i32
    %c0_i32_0 = arith.constant 0 : i32
    %c0_i32_1 = arith.constant 0 : i32
    return %c0_i32, %c0_i32_0 : i32, i32
  }
  func.func @transform_2(%arg0: i32, %arg1: i32) -> (i32, i32) {
    %c0_i32 = arith.constant 0 : i32
    %c0_i32_0 = arith.constant 0 : i32
    %c0_i32_1 = arith.constant 0 : i32
    return %c0_i32, %c0_i32_0 : i32, i32
  }
  func.func @transform_3(%arg0: i32, %arg1: i32) -> (i32, i32, i32) {
    %c0_i32 = arith.constant 0 : i32
    %c0_i32_0 = arith.constant 0 : i32
    %c0_i32_1 = arith.constant 0 : i32
    %c0_i32_2 = arith.constant 0 : i32
    return %c0_i32, %c0_i32_0, %c0_i32_1 : i32, i32, i32
  }
  func.func @transform_4(%arg0: i32, %arg1: i32) -> (i32, i32) {
    %c0_i32 = arith.constant 0 : i32
    %c0_i32_0 = arith.constant 0 : i32
    %c0_i32_1 = arith.constant 0 : i32
    return %c0_i32, %c0_i32_0 : i32, i32
  }
  func.func @transform_5(%arg0: i32, %arg1: i32) -> (i32, i32) {
    %c0_i32 = arith.constant 0 : i32
    %c0_i32_0 = arith.constant 0 : i32
    %c0_i32_1 = arith.constant 0 : i32
    return %c0_i32, %c0_i32_0 : i32, i32
  }
  func.func @transform_6(%arg0: i32, %arg1: i32) -> (i32, i32) {
    %c0_i32 = arith.constant 0 : i32
    %c0_i32_0 = arith.constant 0 : i32
    %c0_i32_1 = arith.constant 0 : i32
    return %c0_i32, %c0_i32_0 : i32, i32
  }
  func.func @transform_7(%arg0: i32, %arg1: i32) -> (i32, i32) {
    %c0_i32 = arith.constant 0 : i32
    %c0_i32_0 = arith.constant 0 : i32
    %c0_i32_1 = arith.constant 0 : i32
    return %c0_i32, %c0_i32_0 : i32, i32
  }
  func.func @transform_8(%arg0: i32, %arg1: i32) -> (i32, i32) {
    %c0_i32 = arith.constant 0 : i32
    %c0_i32_0 = arith.constant 0 : i32
    %c0_i32_1 = arith.constant 0 : i32
    return %c0_i32, %c0_i32_0 : i32, i32
  }
  func.func @transform_9(%arg0: i32, %arg1: i32) -> (i32, i32, i32, i32) {
    %c0_i32 = arith.constant 0 : i32
    %c0_i32_0 = arith.constant 0 : i32
    %c0_i32_1 = arith.constant 0 : i32
    return %arg0, %arg1, %c0_i32, %c0_i32_0 : i32, i32, i32, i32
  }
}

</mosaic_0001>

<bundles_post_ra>
// kernel: tpu_custom_call.1
= control target key start
LH: loop header
LB: loop body
LE: loop exit
PB: predicated region body
PF: predicated region fallthrough
CT: control target
= control target key end

     0   :  { %s2676_s0 = inlined_call_operand.vmem [shape: bf16[2,16,16,8], index: 0, kind: input, shape index: {}]   ;;  %s2677_s1 = inlined_call_operand.vmem [shape: bf16[8,4], index: 1, kind: input, shape index: {}]   ;;  %s2678_s2 = inlined_call_operand.vmem [shape: f32[1,4], index: 2, kind: input, shape index: {}]   ;;  %s2679_s3 = inlined_call_operand.vmem [shape: bf16[3,12,4], index: 3, kind: input, shape index: {}]   ;;  %s2680_s4 = inlined_call_operand.vmem [shape: f32[1,4], index: 4, kind: input, shape index: {}]   ;;  %s2681_s5 = inlined_call_operand.vmem [shape: bf16[4,16], index: 5, kind: input, shape index: {}]   ;;  %s2682_s6 = inlined_call_operand.vmem [shape: f32[1,16], index: 6, kind: input, shape index: {}]   ;;  %s2683_s7 = inlined_call_operand.vmem [shape: bf16[8,16], index: 7, kind: input, shape index: {}]   ;;  %s2684_s8 = inlined_call_operand.vmem [shape: f32[1,16], index: 8, kind: input, shape index: {}]   ;;  %s2685_s9 = inlined_call_operand.hbm [shape: bf16[2,16,16,16], index: 9, kind: output, shape index: {}]  }
   0x1   :  { %2688 = sst [smem:[#allocation6_spill]] %s2676_s0 }
   0x2   :  { %2689 = sst [smem:[#allocation7_spill]] %s2677_s1 }
   0x3   :  { %14 = vsyncpa [#allocation4], 0 }
   0x4   :  { %16 = vsyncpa [#allocation4 + $0x1], 0  ;;  %s2205_s30 = smov 0   ;;  %s2207_s10 = smov 0  }
   0x5   :  { %s2209_s11 = smov 0   ;;  %s2211_s12 = smov 0  }
   0x6   :  { %s2213_s13 = smov 0   ;;  %s2215_s14 = smov 0  }
   0x7   :  { %s2217_s15 = smov 0   ;;  %s2219_s16 = smov 0  }
   0x8 LB: > { %s1633_s17 = sadd.s32 4294967295, %s2146_s16   ;;  %s1634_s18 = sadd.s32 4294967294, %s2146_s16   ;;  %s2146_s16 = sphi %s2219_s16, %s22_s16   ;;  %s2142_s15 = sphi %s2217_s15, %s2704_s15   ;;  %s2138_s14 = sphi %s2215_s14, %s2703_s14   ;;  %s2134_s13 = sphi %s2213_s13, %s2702_s13   ;;  %s2130_s12 = sphi %s2211_s12, %s2701_s12   ;;  %s2126_s11 = sphi %s2209_s11, %s2700_s11   ;;  %s2122_s10 = sphi %s2207_s10, %s2699_s10   ;;  %s2118_s30 = sphi %s2205_s30, %s2698_s30  }
   0x9   : > { %s31_s19 = sadd.s32 1, %s2138_s14  ;;  %s34_s20 = sadd.s32 1, %s2142_s15 }
   0xa   : > { %p32_p0 = scmp.ge.s32.totalorder %s31_s19, 4  ;;  %p247_p1 = scmp.ne.s32.totalorder %s2126_s11, %s2122_s10 }
   0xb   : > { %p248_p2 = scmp.eq.s32.totalorder %s1633_s17, 7  ;;  %p253_p5 = scmp.ne.s32.totalorder %s2122_s10, %s2118_s30 }
   0xc   : > { %s2706_s19 = smov (%p32_p0, %s31_s19), 0  ;;  %s2708_s20 = smov (!%p32_p0, %s34_s20), %s2142_s15 }
   0xd   : > { %s233_s21 = ssub.s32 %s2138_s14, %s2706_s19  ;;  %p2256_p3 = por %p248_p2, %p247_p1 }
   0xe   : > { %p36_p4 = scmp.ge.s32.totalorder %s2708_s20, 2  ;;  %p254_p6 = scmp.eq.s32.totalorder %s1634_s18, 7 }
   0xf   : > { %p1637_p7 = scmp.ge.s32.totalorder %s2146_s16, 1  ;;  %p304_p9 = scmp.lt.s32.totalorder %s2146_s16, 9 }
  0x10   : > { %s2710_s20 = smov (%p36_p4, %s2708_s20), 0  ;;  %p2265_p8 = por %p254_p6, %p253_p5 }
  0x11   : > { %s232_s24 = ssub.s32 %s2142_s15, %s2710_s20  ;;  %s237_s25 = sadd.s32 1, %s2126_s11 }
  0x12   : > { %s234_s26 = sor.u32 %s233_s21, %s232_s24  ;;  %p305_p10 = pnand %p1637_p7, %p304_p9 }
  0x13   : > { %p235_p11 = scmp.eq.s32.totalorder %s234_s26, 0  ;;  %s2686_s28 = sand.u32 (!%p305_p10), 1, %s2122_s10   ;;  %vm358_vm0 = vcmask (!%p305_p10), 24576   ;;  %vm359_vm1 = vsmask.f32 (!%p305_p10), 256  ;;  %vm351_vm2 = vcmask (!%p305_p10), 27648  }
  0x14   : > { %308 = sbr.rel (%p305_p10) target bundleno = 965 (0x3c5), region = 56  ;;  %p340_p12 = scmp.lt.s32.totalorder (!%p305_p10), %s2134_s13, 1  ;;  %vm2287_vm3 = vmand (!%p305_p10), %vm358_vm0, %vm359_vm1  ;;  %v2148_v1 = vmov (!%p305_p10), 0  }
  0x15   : > { %s2274_s27 = scalar_select %p235_p11, %s2126_s11, %s237_s25  }
  0x16   : > { %s2280_s29 = sshll.u32 (!%p305_p10), %s2686_s28, 5  ;;  %s2283_s17 = sshll.u32 (!%p305_p10), %s2130_s12, 2 }
  0x17   : > { %s1769_s18 = sshll.u32 (!%p305_p10), %s2130_s12, 6  ;;  %s2694_s0 = sld [smem:[#allocation6_spill]] (!%p305_p10) }
  0x18   : > { %s2291_s25 = scalar_lea.vmem (!%p305_p10), [#allocation2], %s1769_s18  ;;  %p1644_p13 = scmp.ne.s32.totalorder (!%p305_p10), %s2283_s17, 0 }
  0x19   : > { %352 = vst.msk [vmem:[%s2291_s25] sm:$0xf] (!%p305_p10), %vm351_vm2, %v2148_v1  ;;  %353 = vst.msk [vmem:[%s2291_s25 + $0x10] sm:$0xf] (!%p305_p10), %vm351_vm2, %v2148_v1  ;;  %v361_v2 = vld [vmem:[%s2291_s25 + $0xc] sm:$0x1] (!%p305_p10) }
  0x1a   : > { %354 = vst.msk [vmem:[%s2291_s25 + $0x20] sm:$0xf] (!%p305_p10), %vm351_vm2, %v2148_v1  ;;  %355 = vst.msk [vmem:[%s2291_s25 + $0x30] sm:$0xf] (!%p305_p10), %vm351_vm2, %v2148_v1  ;;  %v364_v3 = vld [vmem:[%s2291_s25 + $0x1c] sm:$0x1] (!%p305_p10) }
  0x1b   : > { %s341_s21 = scalar_select %p340_p12, %s2134_s13, 1  ;;  %356 = vst.msk [vmem:[%s2291_s25 + $0x40] sm:$0xf] %vm351_vm2, %v2148_v1  ;;  %357 = vst.msk [vmem:[%s2291_s25 + $0x50] sm:$0xf] %vm351_vm2, %v2148_v1  ;;  %v362_v4 = vsel %vm2287_vm3, 0, %v361_v2 }
  0x1c   : > { %v365_v5 = vsel %vm2287_vm3, 0, %v364_v3  ;;  %v367_v6 = vld [vmem:[%s2291_s25 + $0x2c] sm:$0x1]  ;;  %v370_v7 = vld [vmem:[%s2291_s25 + $0x3c] sm:$0x1]  ;;  %382 = sbr.rel (%p1644_p13) target bundleno = 42 (0x2a), region = 60 }
  0x1d   : > { %s1767_s24 = sshll.u32 %s341_s21, 7  ;;  %363 = vst [vmem:[%s2291_s25 + $0xc] sm:$0x1] %v362_v4  ;;  %366 = vst [vmem:[%s2291_s25 + $0x1c] sm:$0x1] %v365_v5  ;;  %v368_v8 = vsel %vm2287_vm3, 0, %v367_v6 }
  0x1e   : > { %s2310_s21 = scalar_lea.vmem %s2694_s0, %s1767_s24  ;;  %v371_v9 = vsel %vm2287_vm3, 0, %v370_v7  ;;  %v373_v10 = vld [vmem:[%s2291_s25 + $0x4c] sm:$0x1]  ;;  %v376_v11 = vld [vmem:[%s2291_s25 + $0x5c] sm:$0x1]  ;;  %s2335_s24 = scalar_lea.vmem [#allocation3], %s2280_s29 }
  0x1f   : > { %369 = vst [vmem:[%s2291_s25 + $0x2c] sm:$0x1] %v368_v8  ;;  %372 = vst [vmem:[%s2291_s25 + $0x3c] sm:$0x1] %v371_v9  ;;  %v374_v12 = vsel %vm2287_vm3, 0, %v373_v10  ;;  %v377_v13 = vsel %vm2287_vm3, 0, %v376_v11 }
  0x20   : > { %375 = vst [vmem:[%s2291_s25 + $0x4c] sm:$0x1] %v374_v12  ;;  %378 = vst [vmem:[%s2291_s25 + $0x5c] sm:$0x1] %v377_v13  ;;  %v2149_v15 = vmov (!%p1644_p13), 0  }
  0x21   : > { %383 = vst.msk [vmem:[#allocation2] sm:$0xf] (!%p1644_p13), %vm351_vm2, %v2149_v15  ;;  %384 = vst.msk [vmem:[#allocation2 + $0x4] sm:$0xf] (!%p1644_p13), %vm351_vm2, %v2149_v15 }
  0x22   : > { %385 = vst.msk [vmem:[#allocation2 + $0x8] sm:$0xf] (!%p1644_p13), %vm351_vm2, %v2149_v15 }
  0x27   : > { %v386_v14 = vld [vmem:[#allocation2 + $0xc] sm:$0x1] }
  0x28   : > { %v387_v16 = vsel %vm2287_vm3, 0, %v386_v14 }
  0x29   : > { %388 = vst [vmem:[#allocation2 + $0xc] sm:$0x1] %v387_v16 }
  0x2a PF: > { %s389_s26 = sadd.s32 6, %s2283_s17 }
  0x2b   : > { %p1645_p0 = scmp.lt.s32.totalorder %s389_s26, 18 }
  0x2c   : > { %v2150_v18 = vmov (!%p1645_p0), 0  }
  0x2d   : > { %393 = sbr.rel (%p1645_p0) target bundleno = 52 (0x34), region = 64  ;;  %395 = vst.msk [vmem:[#allocation2 + $0x110] sm:$0xf] (!%p1645_p0), %vm351_vm2, %v2150_v18  ;;  %396 = vst.msk [vmem:[#allocation2 + $0x114] sm:$0xf] (!%p1645_p0), %vm351_vm2, %v2150_v18 }
  0x2e   : > { %v398_v17 = vld [vmem:[#allocation2 + $0x11c] sm:$0x1] (!%p1645_p0)  ;;  %397 = vst.msk [vmem:[#allocation2 + $0x118] sm:$0xf] (!%p1645_p0), %vm351_vm2, %v2150_v18 }
  0x2f   : > { %v399_v19 = vsel (!%p1645_p0), %vm2287_vm3, 0, %v398_v17 }
  0x30   : > { %400 = vst [vmem:[#allocation2 + $0x11c] sm:$0x1] (!%p1645_p0), %v399_v19 }
  0x34 PF: > { %s2695_s1 = sld [smem:[#allocation7_spill]]  ;;  %vm478_vm4 = vcmask 1043456   ;;  %s1646_s26 = sadd.s32 4294967295, %s2283_s17  ;;  %vm459_vm5 = vcmask 64512   ;;  %v1654_v28 = vld [vmem:[%s2678_s2] ss:$0 sm:$0xff] }
  0x35   : > { %p402_p1 = scmp.gt.s32.totalorder %s1646_s26, 0  ;;  %p1647_p2 = scmp.lt.s32.totalorder %s1646_s26, 10  ;;  %vm751_vm6 = vcmask 1042432   ;;  %vm954_vm7 = vcmask 1045504   ;;  %vm1297_vm8 = vcmask 1041408   ;;  %vm780_vm9 = vcmask 31744  }
  0x36   : > { %s2151_s18 = smov 8   ;;  %vm817_vm10 = vsmask.f32 4352  ;;  %vm941_vm11 = vcmask 97280   ;;  %vm1522_vm12 = vcmask 125952  }
  0x37   : > { %s2712_s26 = smov (!%p402_p1, %s1646_s26), 0 }
  0x38   : > { %s2714_s26 = smov (!%p1647_p2, %s2712_s26), 10 }
  0x39   : > { %s1772_s28 = sshll.u32 %s2714_s26, 3  ;;  %s1679_s29 = sshll.u32 %s2714_s26, 4 }
  0x3a   : > { %v421_v20 = vld [vmem:[%s2695_s1] sm:$0xf]  ;;  %s408_s0 = scalar_lea.vmem %s2310_s21, %s1772_s28  ;;  %s2687_s26 = smov 4  }
  0x3b   : > { %1932 = vmatprep.subr.msk.bf16.mxu0 %vm478_vm4, %v421_v20  ;;  %v480_v21 = vsel %vm478_vm4, %v421_v20, 0  ;;  %v2015_v22 = vld [vmem:[%s408_s0] sm:$0xff]   ;;  %v2016_v23 = vld [vmem:[%s408_s0 + $0x8] sm:$0xff]   ;;  %v2017_v24 = vld [vmem:[%s408_s0 + $0x10] sm:$0xff]   ;;  %s1786_s28 = sshll.u32 %s2130_s12, 5 }
  0x3c   : > { %1829 = vmatpush3.bf16.msra.mxu0 %v480_v21  ;;  %1830 = vmatprep.mubr.msk.bf16.mxu0 %vm459_vm5, %v2015_v22  ;;  %v2018_v25 = vld [vmem:[%s408_s0 + $0x18] sm:$0xff]   ;;  %v2019_v26 = vld [vmem:[%s408_s0 + $0x20] sm:$0xff]   ;;  %v2020_v27 = vld [vmem:[%s408_s0 + $0x28] sm:$0xff]   ;;  %s2369_s0 = scalar_lea.vmem [#allocation2], %s1679_s29  ;;  %s2571_s17 = scalar_lea.vmem %s2310_s21, %s1786_s28 }
  0x3d   : > { %s2696_s28 = sand.u32 1, %s2122_s10  }
  0x3f   : > { %1831 = vmatmul.mubr.msk.bf16.vlgmr.msra.gmra.mrb[0].mxu0 %vm459_vm5, %v2016_v23 }
  0x40   : > { %1834 = vmatprep.mubr.msk.bf16.mxu0 %vm459_vm5, %v2017_v24 }
  0x47   : > { %1835 = vmatmul.mubr.msk.bf16.gmra.mrb[4].mxu0 %vm459_vm5, %v2018_v25 }
  0x48   : > { %1838 = vmatprep.mubr.msk.bf16.mxu0 %vm459_vm5, %v2019_v26 }
  0x4f   : > { %1839 = vmatmul.mubr.msk.bf16.gmra.mrb[8].mxu0 %vm459_vm5, %v2020_v27 }
 0x112   : > { %v1832_v29 = vpop.f32.mrb[0].mxu0 }
 0x113   : > { %v525_v30 = vadd.f32 %v1832_v29, %v1654_v28  ;;  %v516_v31 = vpop.f32.mrb[1].mxu0 }
 0x114   : > { %v517_v32 = vadd.f32 %v1654_v28, %v516_v31  ;;  %v1833_v33 = vpop.f32.mrb[2].mxu0 }
 0x115   : > { %v565_v34 = vmax.f32 %v525_v30, 0.0  ;;  %v528_v35 = vadd.f32 %v1833_v33, %v1654_v28  ;;  %v519_v36 = vpop.f32.mrb[3].mxu0 }
 0x116   : > { %v563_v37 = vmax.f32 %v517_v32, 0.0  ;;  %v520_v38 = vadd.f32 %v1654_v28, %v519_v36 }
 0x117   : > { %v1775_v39 = vpack.c.bf16 %v565_v34, %v565_v34  ;;  %v566_v40 = vmax.f32 %v528_v35, 0.0 }
 0x118   : > { %v1773_v41 = vpack.c.bf16 %v563_v37, %v563_v37  ;;  %v564_v42 = vmax.f32 %v520_v38, 0.0 }
 0x119   : > { %1682 = vst.msk [vmem:[%s2369_s0 + $0x24] sm:$0xf] %vm351_vm2, %v1775_v39  ;;  %v1776_v43 = vpack.c.bf16 %v566_v40, %v566_v40 }
 0x11a   : > { %1680 = vst.msk [vmem:[%s2369_s0 + $0x14] sm:$0xf] %vm351_vm2, %v1773_v41  ;;  %v1774_v44 = vpack.c.bf16 %v564_v42, %v564_v42  ;;  %v1836_v45 = vpop.f32.mrb[4].mxu0 }
 0x11b   : > { %1683 = vst.msk [vmem:[%s2369_s0 + $0x28] sm:$0xf] %vm351_vm2, %v1776_v43  ;;  %v541_v46 = vadd.f32 %v1836_v45, %v1654_v28  ;;  %v532_v47 = vpop.f32.mrb[5].mxu0 }
 0x11c   : > { %1681 = vst.msk [vmem:[%s2369_s0 + $0x18] sm:$0xf] %vm351_vm2, %v1774_v44  ;;  %v533_v48 = vadd.f32 %v1654_v28, %v532_v47  ;;  %v1837_v49 = vpop.f32.mrb[6].mxu0 }
 0x11d   : > { %v569_v50 = vmax.f32 %v541_v46, 0.0  ;;  %v544_v51 = vadd.f32 %v1837_v49, %v1654_v28  ;;  %v535_v52 = vpop.f32.mrb[7].mxu0 }
 0x11e   : > { %v567_v53 = vmax.f32 %v533_v48, 0.0  ;;  %v536_v54 = vadd.f32 %v1654_v28, %v535_v52 }
 0x11f   : > { %v1779_v55 = vpack.c.bf16 %v569_v50, %v569_v50  ;;  %v570_v56 = vmax.f32 %v544_v51, 0.0 }
 0x120   : > { %v1777_v57 = vpack.c.bf16 %v567_v53, %v567_v53  ;;  %v568_v58 = vmax.f32 %v536_v54, 0.0 }
 0x121   : > { %1686 = vst.msk [vmem:[%s2369_s0 + $0x44] sm:$0xf] %vm351_vm2, %v1779_v55  ;;  %v1780_v59 = vpack.c.bf16 %v570_v56, %v570_v56 }
 0x122   : > { %1684 = vst.msk [vmem:[%s2369_s0 + $0x34] sm:$0xf] %vm351_vm2, %v1777_v57  ;;  %v1778_v60 = vpack.c.bf16 %v568_v58, %v568_v58  ;;  %v1840_v61 = vpop.f32.mrb[8].mxu0 }
 0x123   : > { %1687 = vst.msk [vmem:[%s2369_s0 + $0x48] sm:$0xf] %vm351_vm2, %v1780_v59  ;;  %v557_v62 = vadd.f32 %v1840_v61, %v1654_v28  ;;  %v548_v63 = vpop.f32.mrb[9].mxu0  ;;  %v2041_v61 = vld [vmem:[%s2679_s3 + $0x8] sm:$0x3f]  }
 0x124   : > { %1685 = vst.msk [vmem:[%s2369_s0 + $0x38] sm:$0xf] %vm351_vm2, %v1778_v60  ;;  %v549_v0 = vadd.f32 %v1654_v28, %v548_v63  ;;  %v1841_v1 = vpop.f32.mrb[10].mxu0  ;;  %1933 = vmatprep.subr.msk.bf16.mxu1 %vm954_vm7, %v2041_v61 }
 0x125   : > { %v573_v2 = vmax.f32 %v557_v62, 0.0  ;;  %v560_v3 = vadd.f32 %v1841_v1, %v1654_v28  ;;  %v551_v4 = vpop.f32.mrb[11].mxu0  ;;  %v956_v1 = vsel %vm954_vm7, %v2041_v61, 0 }
 0x126   : > { %v571_v5 = vmax.f32 %v549_v0, 0.0  ;;  %v552_v6 = vadd.f32 %v1654_v28, %v551_v4  ;;  %1843 = vmatpush3.bf16.msra.mxu1 %v956_v1 }
 0x127   : > { %v1783_v7 = vpack.c.bf16 %v573_v2, %v573_v2  ;;  %v574_v8 = vmax.f32 %v560_v3, 0.0  ;;  %v2464_v2 = vld [vmem:[%s2679_s3] sm:$0x3f]  }
 0x128   : > { %v1781_v9 = vpack.c.bf16 %v571_v5, %v571_v5  ;;  %v572_v10 = vmax.f32 %v552_v6, 0.0  ;;  %1934 = vmatprep.subr.msk.bf16.mxu1 %vm954_vm7, %v2464_v2 }
 0x129   : > { %1690 = vst.msk [vmem:[%s2369_s0 + $0x64] sm:$0xf] %vm351_vm2, %v1783_v7  ;;  %v1784_v11 = vpack.c.bf16 %v574_v8, %v574_v8 }
 0x12a   : > { %1688 = vst.msk [vmem:[%s2369_s0 + $0x54] sm:$0xf] %vm351_vm2, %v1781_v9  ;;  %v1782_v12 = vpack.c.bf16 %v572_v10, %v572_v10 }
 0x12b   : > { %1691 = vst.msk [vmem:[%s2369_s0 + $0x68] sm:$0xf] %vm351_vm2, %v1784_v11 }
 0x12c   : > { %1689 = vst.msk [vmem:[%s2369_s0 + $0x58] sm:$0xf] %vm351_vm2, %v1782_v12 }
 0x133   : > { %v2396_v13 = vld [vmem:[%s2291_s25 + $0x24] sm:$0xf]  ;;  %v2399_v14 = vld [vmem:[%s2291_s25 + $0x28] sm:$0xf]  ;;  %v2402_v15 = vld [vmem:[%s2291_s25 + $0x14] sm:$0xf] }
 0x134   : > { %v1702_v16 = vcombine.low %v2396_v13, %v2399_v14  ;;  %v2407_v17 = vld [vmem:[%s2291_s25 + $0x18] sm:$0xf]  ;;  %v2410_v18 = vld [vmem:[%s2291_s25 + $0x34] sm:$0xf]  ;;  %v2424_v31 = vld [vmem:[%s2291_s25 + $0x44] sm:$0xf] }
 0x135   : > { %v2413_v19 = vld [vmem:[%s2291_s25 + $0x38] sm:$0xf]  ;;  %v1701_v20 = vcombine.low %v2402_v15, %v2407_v17  ;;  %v2024_v22 = vld [vmem:[%s2291_s25 + $0x3c] ss:$0 sps:$4 sm:$0x11]  }
 0x136   : > { %v1703_v21 = vcombine.low %v2410_v18, %v2413_v19  ;;  %v758_v23 = vrot.slane %v1702_v16, 5  ;;  %v762_v26 = vrot.slane %v2024_v22, 5  ;;  %v2025_v28 = vld [vmem:[%s2291_s25 + $0x1c] ss:$0 sps:$4 sm:$0x11]   ;;  %v716_v30 = vshrl.u32 %v1702_v16, 16 }
 0x137   : > { %v755_v24 = vrot.slane %v1701_v20, 5  ;;  %v708_v27 = vshrl.u32 %v1701_v20, 16  ;;  %v711_v29 = vshll.u32 %v1701_v20, 16  ;;  %v2427_v32 = vld [vmem:[%s2291_s25 + $0x48] sm:$0xf]  ;;  %v719_v35 = vshll.u32 %v1702_v16, 16 }
 0x138   : > { %v761_v25 = vrot.slane %v1703_v21, 5  ;;  %772 = vrot.lane.b32.xlu0 %v758_v23, %s2151_s18  ;;  %v1710_v37 = vcombine.low %v2424_v31, %v2427_v32  ;;  %v756_v38 = vrot.slane %v2025_v28, 5  ;;  %v2026_v39 = vld [vmem:[%s2291_s25 + $0x2c] ss:$0 sps:$4 sm:$0x11]   ;;  %v718_v40 = vrot.slane %v716_v30, 4 }
 0x139   : > { %768 = vrot.lane.b32.xlu1 %v755_v24, %s2151_s18  ;;  %v710_v33 = vrot.slane %v708_v27, 4  ;;  %v713_v34 = vrot.slane %v711_v29, 5  ;;  %v721_v42 = vrot.slane %v719_v35, 5  ;;  %v724_v43 = vshrl.u32 %v1703_v21, 16  ;;  %v2436_v47 = vld [vmem:[%s2291_s25 + $0x4] sm:$0xf] }
 0x13a   : > { %v763_v36 = vsel %vm751_vm6, %v761_v25, %v762_v26  ;;  %v727_v44 = vshll.u32 %v1703_v21, 16  ;;  %v890_v45 = vshrl.u32 %v1710_v37, 16  ;;  %v893_v46 = vshll.u32 %v1710_v37, 16  ;;  %v2439_v48 = vld [vmem:[%s2291_s25 + $0x8] sm:$0xf] }
 0x13b   : > { %v714_v41 = vor.u32 %v713_v34, %v710_v33  ;;  %v757_v49 = vsel %vm751_vm6, %v755_v24, %v756_v38  ;;  %v759_v50 = vrot.slane %v2026_v39, 5  ;;  %v722_v51 = vor.u32 %v721_v42, %v718_v40  ;;  %v2028_v54 = vld [vmem:[%s2291_s25 + $0x4c] ss:$0 sps:$4 sm:$0x11]   ;;  %v2448_v58 = vld [vmem:[%s2291_s25 + $0x54] sm:$0xf] }
 0x13c   : > { %778 = vrot.lane.b32.xlu0 %v763_v36, %s2151_s18  ;;  %v726_v52 = vrot.slane %v724_v43, 4  ;;  %v729_v53 = vrot.slane %v727_v44, 5  ;;  %v1700_v55 = vcombine.low %v2436_v47, %v2439_v48  ;;  %v892_v56 = vrot.slane %v890_v45, 4  ;;  %v2453_v60 = vld [vmem:[%s2291_s25 + $0x58] sm:$0xf] }
 0x13d   : > { %776 = vrot.lane.b32.xlu1 %v761_v25, %s2151_s18  ;;  %v895_v57 = vrot.slane %v893_v46, 5  ;;  %v760_v59 = vsel %vm751_vm6, %v758_v23, %v759_v50  ;;  %v1726_v4 = vcombine.low %v2448_v58, %v2453_v60  ;;  %v902_v5 = vrot.slane %v1710_v37, 5  ;;  %v2031_v11 = vld [vmem:[%s2291_s25 + $0xc] ss:$0 sps:$4 sm:$0x11]  }
 0x13e   : > { %v730_v62 = vor.u32 %v729_v53, %v726_v52  ;;  %v700_v63 = vshrl.u32 %v1700_v55, 16  ;;  %v703_v0 = vshll.u32 %v1700_v55, 16  ;;  %v903_v6 = vrot.slane %v2028_v54, 5  ;;  %v2032_v24 = vld [vmem:[%s2291_s25 + $0x5c] ss:$0 sps:$4 sm:$0x11]  }
 0x13f   : > { %v896_v3 = vor.u32 %v895_v57, %v892_v56  ;;  %v1109_v9 = vshrl.u32 %v1726_v4, 16  ;;  %v1112_v10 = vshll.u32 %v1726_v4, 16  ;;  %v752_v20 = vrot.slane %v1700_v55, 5  ;;  %v1277_v30 = vld [vmem:[%s2681_s5] sm:$0x3] }
 0x140   : > { %733 = vrot.lane.b32.xlu0 %v714_v41, %s2687_s26  ;;  %v702_v7 = vrot.slane %v700_v63, 4  ;;  %v705_v8 = vrot.slane %v703_v0, 5  ;;  %v904_v12 = vsel %vm751_vm6, %v902_v5, %v903_v6  ;;  %v753_v23 = vrot.slane %v2031_v11, 5  ;;  %1936 = vmatprep.subr.msk.bf16.mxu0 %vm1297_vm8, %v1277_v30  ;;  %v643_v37 = vld [vmem:[%s2291_s25 + $0x10] sm:$0xf] }
 0x141   : > { %770 = vrot.lane.b32.xlu1 %v757_v49, %s2151_s18  ;;  %v1111_v21 = vrot.slane %v1109_v9, 4  ;;  %v1114_v22 = vrot.slane %v1112_v10, 5  ;;  %v1121_v27 = vrot.slane %v1726_v4, 5  ;;  %v1122_v28 = vrot.slane %v2032_v24, 5  ;;  %v647_v45 = vld [vmem:[%s2291_s25 + $0x20] sm:$0xf] }
 0x142   : > { %v706_v16 = vor.u32 %v705_v8, %v702_v7  ;;  %v754_v26 = vsel %vm751_vm6, %v752_v20, %v753_v23  ;;  %v1299_v33 = vsel %vm1297_vm8, %v1277_v30, 0  ;;  %v1695_v39 = vcombine.low %v2407_v17, %v2407_v17  ;;  %v655_v46 = vld [vmem:[%s2291_s25 + $0x40] sm:$0xf]  ;;  %v651_v49 = vld [vmem:[%s2291_s25 + $0x30] sm:$0xf] }
 0x143   : > { %v1115_v25 = vor.u32 %v1114_v22, %v1111_v21  ;;  %v1123_v29 = vsel %vm751_vm6, %v1121_v27, %v1122_v28  ;;  %1873 = vmatpush3.bf16.msra.mxu0 %v1299_v33  ;;  %v1694_v40 = vcombine.low %v643_v37, %v2402_v15  ;;  %v1697_v52 = vcombine.low %v2399_v14, %v2399_v14 }
 0x144   : > { %735 = vrot.lane.b32.xlu0 %v722_v51, %s2687_s26  ;;  %v1699_v17 = vcombine.low %v2413_v19, %v2413_v19  ;;  %v1696_v56 = vcombine.low %v647_v45, %v2396_v13  ;;  %v1709_v61 = vcombine.low %v2427_v32, %v2427_v32  ;;  %v639_v13 = vld [vmem:[%s2291_s25] sm:$0xf] }
 0x145   : > { %774 = vrot.lane.b32.xlu1 %v760_v59, %s2151_s18  ;;  %v1708_v59 = vcombine.low %v655_v46, %v2424_v31  ;;  %v1692_v21 = vcombine.low %v639_v13, %v2436_v47 }
 0x148   : > { %737 = vrot.lane.b32.xlu0 %v730_v62, %s2687_s26  ;;  %v1698_v62 = vcombine.low %v651_v49, %v2410_v18 }
 0x149   : > { %897 = vrot.lane.b32.xlu1 %v896_v3, %s2687_s26 }
 0x14c   : > { %905 = vrot.lane.b32.xlu0 %v902_v5, %s2151_s18 }
 0x14d   : > { %907 = vrot.lane.b32.xlu1 %v904_v12, %s2151_s18 }
 0x150   : > { %731 = vrot.lane.b32.xlu0 %v706_v16, %s2687_s26 }
 0x151   : > { %764 = vrot.lane.b32.xlu1 %v752_v20, %s2151_s18 }
 0x154   : > { %766 = vrot.lane.b32.xlu0 %v754_v26, %s2151_s18 }
 0x155   : > { %1116 = vrot.lane.b32.xlu1 %v1115_v25, %s2687_s26 }
 0x158   : > { %1124 = vrot.lane.b32.xlu0 %v1121_v27, %s2151_s18 }
 0x159   : > { %1126 = vrot.lane.b32.xlu1 %v1123_v29, %s2151_s18  ;;  %v1032_v29 = vsel %vm954_vm7, %v2464_v2, 0  ;;  %s1763_s18 = sshll.u32 %s2134_s13, 5  ;;  %s1548_s13 = sshll.u32 %s2335_s24, 4  ;;  %s2608_s13 = int_to_ptr.vmem [resolvable:$true] %s1548_s13 }
 0x1aa   : > { %v773_v34 = vpop.permute.xlu0 %772 }
 0x1ab   : > { %v769_v35 = vpop.permute.xlu1 %768 }
 0x1ae   : > { %v779_v36 = vpop.permute.xlu0 %778 }
 0x1af   : > { %v777_v38 = vpop.permute.xlu1 %776 }
 0x1b2   : > { %v734_v41 = vpop.permute.xlu0 %733 }
 0x1b3   : > { %v771_v42 = vpop.permute.xlu1 %770  ;;  %v788_v43 = vsel %vm780_vm9, %v1694_v40, %v734_v41  ;;  %v790_v44 = vsel %vm780_vm9, %v1695_v39, %v734_v41 }
 0x1b4   : > { %v806_v50 = vsel %vm459_vm5, %v788_v43, %v769_v35  ;;  %v808_v51 = vsel %vm459_vm5, %v790_v44, %v771_v42 }
 0x1b5   : > { %v833_v15 = vshrl.u32 %v806_v50, 16  ;;  %v836_v53 = vshll.u32 %v806_v50, 16  ;;  %v840_v54 = vshrl.u32 %v808_v51, 16  ;;  %v843_v55 = vshll.u32 %v808_v51, 16  ;;  %v2047_v50 = vld [vmem:[%s2679_s3 + $0x10] sm:$0x3f]  }
 0x1b6   : > { %v736_v57 = vpop.permute.xlu0 %735 }
 0x1b7   : > { %v835_v63 = vrot.slane %v833_v15, 3  ;;  %v838_v14 = vrot.slane %v836_v53, 4  ;;  %v842_v0 = vrot.slane %v840_v54, 3  ;;  %v845_v1 = vrot.slane %v843_v55, 4  ;;  %v775_v19 = vpop.permute.xlu1 %774 }
 0x1b8   : > { %v793_v3 = vsel %vm780_vm9, %v1696_v56, %v736_v57  ;;  %v795_v4 = vsel %vm780_vm9, %v1697_v52, %v736_v57 }
 0x1b9   : > { %v810_v5 = vsel %vm459_vm5, %v793_v3, %v773_v34  ;;  %v812_v31 = vsel %vm459_vm5, %v795_v4, %v775_v19  ;;  %v839_v6 = vor.u32 %v838_v14, %v835_v63  ;;  %v846_v32 = vor.u32 %v845_v1, %v842_v0  ;;  %v659_v3 = vld [vmem:[%s2291_s25 + $0x50] sm:$0xf] }
 0x1ba   : > { %v848_v7 = vshrl.u32 %v810_v5, 16  ;;  %v851_v18 = vshll.u32 %v810_v5, 16  ;;  %v855_v8 = vshrl.u32 %v812_v31, 16  ;;  %v858_v9 = vshll.u32 %v812_v31, 16  ;;  %v738_v10 = vpop.permute.xlu0 %737 }
 0x1bb   : > { %v898_v11 = vpop.permute.xlu1 %897  ;;  %v798_v12 = vsel %vm780_vm9, %v1698_v62, %v738_v10  ;;  %v800_v16 = vsel %vm780_vm9, %v1699_v17, %v738_v10  ;;  %v2516_v20 = vsel %vm817_vm10, %v839_v6, %v846_v32  ;;  %v1693_v62 = vcombine.low %v2439_v48, %v2439_v48 }
 0x1bc   : > { %v850_v22 = vrot.slane %v848_v7, 3  ;;  %v853_v23 = vrot.slane %v851_v18, 4  ;;  %v857_v24 = vrot.slane %v855_v8, 3  ;;  %v860_v25 = vrot.slane %v858_v9, 4  ;;  %1844 = vmatprep.mubr.msk.bf16.mxu1 %vm941_vm11, %v2516_v20 }
 0x1bd   : > { %v911_v26 = vsel %vm780_vm9, %v1708_v59, %v898_v11  ;;  %v814_v27 = vsel %vm459_vm5, %v798_v12, %v777_v38  ;;  %v816_v28 = vsel %vm459_vm5, %v800_v16, %v779_v36  ;;  %v913_v37 = vsel %vm780_vm9, %v1709_v61, %v898_v11 }
 0x1be   : > { %v854_v30 = vor.u32 %v853_v23, %v850_v22  ;;  %v861_v33 = vor.u32 %v860_v25, %v857_v24  ;;  %v863_v34 = vshrl.u32 %v814_v27, 16  ;;  %v866_v47 = vshll.u32 %v814_v27, 16  ;;  %v906_v35 = vpop.permute.xlu0 %905 }
 0x1bf   : > { %v870_v39 = vshrl.u32 %v816_v28, 16  ;;  %v873_v40 = vshll.u32 %v816_v28, 16  ;;  %v908_v41 = vpop.permute.xlu1 %907  ;;  %v915_v42 = vsel %vm459_vm5, %v911_v26, %v906_v35  ;;  %v1724_v7 = vcombine.low %v659_v3, %v2448_v58 }
 0x1c0   : > { %v865_v43 = vrot.slane %v863_v34, 3  ;;  %v868_v44 = vrot.slane %v866_v47, 4  ;;  %v917_v38 = vsel %vm459_vm5, %v913_v37, %v908_v41  ;;  %v918_v36 = vshrl.u32 %v915_v42, 16 }
 0x1c1   : > { %v872_v45 = vrot.slane %v870_v39, 3  ;;  %v875_v46 = vrot.slane %v873_v40, 4  ;;  %v925_v2 = vshrl.u32 %v917_v38, 16  ;;  %v928_v49 = vshll.u32 %v917_v38, 16 }
 0x1c2   : > { %v869_v51 = vor.u32 %v868_v44, %v865_v43  ;;  %v920_v52 = vrot.slane %v918_v36, 3  ;;  %v921_v17 = vshll.u32 %v915_v42, 16  ;;  %v862_v15 = vsel %vm817_vm10, %v854_v30, %v861_v33  ;;  %v732_v53 = vpop.permute.xlu0 %731  ;;  %v1366_v42 = vld [vmem:[%s2683_s7] sm:$0xf] }
 0x1c3   : > { %v876_v54 = vor.u32 %v875_v46, %v872_v45  ;;  %v927_v55 = vrot.slane %v925_v2, 3  ;;  %v930_v56 = vrot.slane %v928_v49, 4  ;;  %1845 = vmatmul.mubr.msk.bf16.vlgmr.msra.gmra.mrb[0].mxu1 %vm941_vm11, %v862_v15  ;;  %v765_v57 = vpop.permute.xlu1 %764  ;;  %v783_v59 = vsel %vm780_vm9, %v1692_v21, %v732_v53  ;;  %1937 = vmatprep.subr.msk.bf16.mxu0 %vm478_vm4, %v1366_v42 }
 0x1c4   : > { %v923_v61 = vrot.slane %v921_v17, 4  ;;  %1853 = vmatpush3.bf16.msra.mxu1 %v1032_v29  ;;  %v802_v63 = vsel %vm459_vm5, %v783_v59, %v765_v57  ;;  %v785_v13 = vsel %vm780_vm9, %v1693_v62, %v732_v53  ;;  %v1725_v9 = vcombine.low %v2453_v60, %v2453_v60 }
 0x1c5   : > { %v931_v14 = vor.u32 %v930_v56, %v927_v55  ;;  %v818_v0 = vshrl.u32 %v802_v63, 16  ;;  %v821_v1 = vshll.u32 %v802_v63, 16  ;;  %v877_v19 = vsel %vm817_vm10, %v869_v51, %v876_v54  ;;  %1935 = vmatprep.subr.msk.bf16.mxu1 %vm954_vm7, %v2047_v50 }
 0x1c6   : > { %v924_v4 = vor.u32 %v923_v61, %v920_v52  ;;  %1848 = vmatprep.mubr.msk.bf16.mxu1 %vm941_vm11, %v877_v19  ;;  %v767_v5 = vpop.permute.xlu0 %766  ;;  %v1164_v40 = vsel %vm954_vm7, %v2047_v50, 0  ;;  %v1407_v57 = vsel %vm478_vm4, %v1366_v42, 0 }
 0x1c7   : > { %v820_v31 = vrot.slane %v818_v0, 3  ;;  %v823_v6 = vrot.slane %v821_v1, 4  ;;  %v1117_v32 = vpop.permute.xlu1 %1116  ;;  %v804_v48 = vsel %vm459_vm5, %v785_v13, %v767_v5  ;;  %v2048_v5 = vld [vmem:[%s2571_s17] sm:$0xff]  }
 0x1c8   : > { %v825_v18 = vshrl.u32 %v804_v48, 16  ;;  %v828_v8 = vshll.u32 %v804_v48, 16  ;;  %v932_v10 = vsel %vm817_vm10, %v924_v4, %v931_v14  ;;  %v1130_v11 = vsel %vm780_vm9, %v1724_v7, %v1117_v32  ;;  %v1738_v48 = vld [vmem:[%s2682_s6] ss:$0 sm:$0xff] }
 0x1c9   : > { %v824_v22 = vor.u32 %v823_v6, %v820_v31  ;;  %v1132_v23 = vsel %vm780_vm9, %v1725_v9, %v1117_v32  ;;  %v2049_v31 = vld [vmem:[%s2571_s17 + $0x8] sm:$0xff]   ;;  %v2050_v6 = vld [vmem:[%s2571_s17 + $0x10] sm:$0xff]   ;;  %v2051_v32 = vld [vmem:[%s2571_s17 + $0x18] sm:$0xff]   ;;  %s1795_s17 = sshll.u32 %s2130_s12, 3 }
 0x1ca   : > { %v827_v12 = vrot.slane %v825_v18, 3  ;;  %v830_v16 = vrot.slane %v828_v8, 4  ;;  %v1125_v21 = vpop.permute.xlu0 %1124  ;;  %v1743_v7 = vld [vmem:[%s2684_s8] ss:$0 sm:$0xff]  ;;  %s1545_s12 = sadd.s32 %s1795_s17, %s1763_s18  ;;  %s2623_s17 = scalar_lea.sflag [#allocation4], %s2696_s28 }
 0x1cb   : > { %1849 = vmatmul.mubr.msk.bf16.gmra.mrb[4].mxu1 %vm941_vm11, %v932_v10  ;;  %v1127_v24 = vpop.permute.xlu1 %1126  ;;  %v1134_v58 = vsel %vm459_vm5, %v1130_v11, %v1125_v21  ;;  %v1898_v18 = vadd.f32 %v1743_v7, %v1738_v48  ;;  %s1764_s29 = sshll.u32 %s1545_s12, 6  ;;  %s2052_s18 = scalar_lea.vmem %s2608_s13, 512 }
 0x1cc   : > { %v831_v25 = vor.u32 %v830_v16, %v827_v12  ;;  %v1136_v26 = vsel %vm459_vm5, %v1132_v23, %v1127_v24  ;;  %v1137_v27 = vshrl.u32 %v1134_v58, 16  ;;  %v1140_v60 = vshll.u32 %v1134_v58, 16  ;;  %s2615_s0 = scalar_lea.hbm %s2685_s9, %s1764_s29  ;;  %p2053_p4 = scmp.ne.s32.totalorder %s2608_s13, %s2052_s18 }
 0x1cd   : > { %v1144_v28 = vshrl.u32 %v1136_v26, 16  ;;  %v1147_v29 = vshll.u32 %v1136_v26, 16  ;;  %s2153_s12 = smov [#allocation3]  }
 0x1ce   : > { %v1139_v30 = vrot.slane %v1137_v27, 3  ;;  %v1142_v33 = vrot.slane %v1140_v60, 4  ;;  %v832_v34 = vsel %vm817_vm10, %v824_v22, %v831_v25  ;;  %p2054_p5 = pnand %p2053_p4, %p2256_p3  ;;  %s2056_s26 = sshll.u32 %s2153_s12, 4  ;;  %s2057_s26 = int_to_ptr.vmem [resolvable:$false] %s2056_s26 }
 0x1cf   : > { %v1146_v47 = vrot.slane %v1144_v28, 3  ;;  %v1149_v35 = vrot.slane %v1147_v29, 4  ;;  %1854 = vmatprep.mubr.msk.bf16.mxu1 %vm941_vm11, %v832_v34  ;;  %s2058_s1 = scalar_lea.vmem %s2057_s26, 1024  ;;  %p2059_p7 = scmp.lt.s32.totalorder %s2608_s13, %s2057_s26 }
 0x1d0   : > { %v1143_v37 = vor.u32 %v1142_v33, %v1139_v30  ;;  %p2055_p6 = pneg %p2054_p5  ;;  %p2060_p9 = scmp.lt.s32.totalorder %s2058_s1, %s2052_s18 }
 0x1d1   : > { %v1150_v39 = vor.u32 %v1149_v35, %v1146_v47 }
 0x1d2   : > { %p2061_p10 = por %p2060_p9, %p2059_p7 }
 0x1d3   : > { %1855 = vmatmul.mubr.msk.bf16.vlgmr.msra.gmra.mrb[0].mxu1 %vm941_vm11, %v2516_v20  ;;  %v1151_v41 = vsel %vm817_vm10, %v1143_v37, %v1150_v39  ;;  %v1735_v20 = vld [vmem:[%s2680_s4] ss:$0 sm:$0xff] }
 0x1d4   : > { %1863 = vmatpush3.bf16.msra.mxu1 %v1164_v40  ;;  %1858 = vmatprep.mubr.msk.bf16.mxu1 %vm941_vm11, %v862_v15  ;;  %p2062_p11 = pnand %p2061_p10, %p2055_p6 }
 0x1db   : > { %1859 = vmatmul.mubr.msk.bf16.gmra.mrb[4].mxu1 %vm941_vm11, %v877_v19 }
 0x1dc   : > { %1864 = vmatprep.mubr.msk.bf16.mxu1 %vm941_vm11, %v862_v15 }
 0x1e3   : > { %1865 = vmatmul.mubr.msk.bf16.vlgmr.msra.gmra.mrb[0].mxu1 %vm941_vm11, %v877_v19 }
 0x1e4   : > { %1868 = vmatprep.mubr.msk.bf16.mxu1 %vm941_vm11, %v932_v10 }
 0x1eb   : > { %1869 = vmatmul.mubr.msk.bf16.gmra.mrb[4].mxu1 %vm941_vm11, %v1151_v41 }
 0x2b6   : > { %v1866_v43 = vpop.f32.mrb[0].mxu1 }
 0x2b7   : > { %v1248_v44 = vadd.f32 %v1866_v43, %v1735_v20  ;;  %v1200_v38 = vpop.f32.mrb[1].mxu1 }
 0x2b8   : > { %v1246_v36 = vadd.f32 %v1735_v20, %v1200_v38  ;;  %v1867_v45 = vpop.f32.mrb[2].mxu1 }
 0x2b9   : > { %v1249_v46 = vadd.f32 %v1867_v45, %v1735_v20  ;;  %v1203_v2 = vpop.f32.mrb[3].mxu1  ;;  %v1256_v50 = vmax.f32 %v1248_v44, 0.0 }
 0x2ba   : > { %v1247_v49 = vadd.f32 %v1735_v20, %v1203_v2  ;;  %v1254_v52 = vmax.f32 %v1246_v36, 0.0 }
 0x2bb   : > { %v1257_v51 = vmax.f32 %v1249_v46, 0.0 }
 0x2bc   : > { %v1255_v17 = vmax.f32 %v1247_v49, 0.0 }
 0x2bd   : > { %v1263_v15 = vpack.c.bf16 %v1257_v51, %v1256_v50 }
 0x2be   : > { %v1262_v53 = vpack.c.bf16 %v1255_v17, %v1254_v52  ;;  %v1870_v54 = vpop.f32.mrb[4].mxu1 }
 0x2bf   : > { %v1252_v55 = vadd.f32 %v1870_v54, %v1735_v20  ;;  %v1216_v56 = vpop.f32.mrb[5].mxu1 }
 0x2c0   : > { %v1250_v59 = vadd.f32 %v1735_v20, %v1216_v56  ;;  %v1871_v61 = vpop.f32.mrb[6].mxu1  ;;  %1874 = vmatprep.mubr.msk.bf16.mxu0 %vm780_vm9, %v1262_v53 }
 0x2c1   : > { %v1253_v62 = vadd.f32 %v1871_v61, %v1735_v20  ;;  %v1219_v63 = vpop.f32.mrb[7].mxu1  ;;  %1875 = vmatmul.mubr.msk.bf16.vlgmr.msra.gmra.mrb[12].mxu0 %vm780_vm9, %v1263_v15  ;;  %v1260_v0 = vmax.f32 %v1252_v55, 0.0 }
 0x2c2   : > { %v1251_v14 = vadd.f32 %v1735_v20, %v1219_v63  ;;  %1883 = vmatpush3.bf16.msra.mxu0 %v1407_v57  ;;  %v1258_v19 = vmax.f32 %v1250_v59, 0.0 }
 0x2c3   : > { %v1261_v1 = vmax.f32 %v1253_v62, 0.0 }
 0x2c4   : > { %v1259_v3 = vmax.f32 %v1251_v14, 0.0 }
 0x2c5   : > { %v1265_v4 = vpack.c.bf16 %v1261_v1, %v1260_v0 }
 0x2c6   : > { %v1264_v13 = vpack.c.bf16 %v1259_v3, %v1258_v19 }
 0x2c8   : > { %1878 = vmatprep.mubr.msk.bf16.mxu0 %vm780_vm9, %v1264_v13 }
 0x2c9   : > { %1879 = vmatmul.mubr.msk.bf16.gmra.mrb[16].mxu0 %vm780_vm9, %v1265_v4 }
 0x2ca   : > { %1884 = vmatprep.mubr.msk.bf16.mxu0 %vm459_vm5, %v2048_v5 }
 0x2d1   : > { %1885 = vmatmul.mubr.msk.bf16.vlgmr.msra.gmra.mrb[12].mxu0 %vm459_vm5, %v2049_v31 }
 0x2d2   : > { %1888 = vmatprep.mubr.msk.bf16.mxu0 %vm459_vm5, %v2050_v6 }
 0x2d9   : > { %1889 = vmatmul.mubr.msk.bf16.gmra.mrb[16].mxu0 %vm459_vm5, %v2051_v32 }
 0x3a4   : > { %v1886_v8 = vpop.f32.mrb[12].mxu0 }
 0x3a5   : > { %v1892_v9 = vadd.f32 %v1886_v8, %v1738_v48  ;;  %v1443_v10 = vpop.f32.mrb[13].mxu0 }
 0x3a6   : > { %v1894_v11 = vadd.f32 %v1738_v48, %v1443_v10  ;;  %v1887_v12 = vpop.f32.mrb[14].mxu0 }
 0x3a7   : > { %v1893_v16 = vadd.f32 %v1892_v9, %v1743_v7  ;;  %v1897_v21 = vadd.f32 %v1898_v18, %v1887_v12  ;;  %v1446_v22 = vpop.f32.mrb[15].mxu0 }
 0x3a8   : > { %v1895_v23 = vadd.f32 %v1894_v11, %v1743_v7  ;;  %v1899_v24 = vadd.f32 %v1898_v18, %v1446_v22 }
 0x3a9   : > { %v1484_v58 = vmax.f32 %v1893_v16, 0.0  ;;  %v1485_v25 = vmax.f32 %v1897_v21, 0.0 }
 0x3aa   : > { %v1482_v26 = vmax.f32 %v1895_v23, 0.0  ;;  %v1483_v27 = vmax.f32 %v1899_v24, 0.0 }
 0x3ab   : > { %v1789_v60 = vpack.c.bf16 %v1484_v58, %v1484_v58  ;;  %v1790_v28 = vpack.c.bf16 %v1485_v25, %v1485_v25 }
 0x3ac   : > { %v1787_v29 = vpack.c.bf16 %v1482_v26, %v1482_v26  ;;  %v1788_v30 = vpack.c.bf16 %v1483_v27, %v1483_v27  ;;  %v1890_v33 = vpop.f32.mrb[16].mxu0 }
 0x3ad   : > { %1525 = vst.msk [vmem:[%s2335_s24 + $0x8] sm:$0xf] %vm1522_vm12, %v1789_v60  ;;  %1526 = vst.msk [vmem:[%s2335_s24 + $0xc] sm:$0xf] %vm1522_vm12, %v1790_v28  ;;  %v1901_v34 = vadd.f32 %v1898_v18, %v1890_v33  ;;  %v1459_v47 = vpop.f32.mrb[17].mxu0 }
 0x3ae   : > { %1523 = vst.msk [vmem:[%s2335_s24] sm:$0xf] %vm1522_vm12, %v1787_v29  ;;  %1524 = vst.msk [vmem:[%s2335_s24 + $0x4] sm:$0xf] %vm1522_vm12, %v1788_v30  ;;  %v1903_v35 = vadd.f32 %v1898_v18, %v1459_v47  ;;  %v1891_v37 = vpop.f32.mrb[18].mxu0 }
 0x3af   : > { %v1488_v39 = vmax.f32 %v1901_v34, 0.0  ;;  %v1905_v40 = vadd.f32 %v1898_v18, %v1891_v37  ;;  %v1462_v41 = vpop.f32.mrb[19].mxu0 }
 0x3b0   : > { %v1486_v42 = vmax.f32 %v1903_v35, 0.0  ;;  %v1907_v20 = vadd.f32 %v1898_v18, %v1462_v41 }
 0x3b1   : > { %v1793_v43 = vpack.c.bf16 %v1488_v39, %v1488_v39  ;;  %v1489_v44 = vmax.f32 %v1905_v40, 0.0 }
 0x3b2   : > { %v1791_v38 = vpack.c.bf16 %v1486_v42, %v1486_v42  ;;  %v1487_v36 = vmax.f32 %v1907_v20, 0.0 }
 0x3b3   : > { %1529 = vst.msk [vmem:[%s2335_s24 + $0x18] sm:$0xf] %vm1522_vm12, %v1793_v43  ;;  %v1794_v45 = vpack.c.bf16 %v1489_v44, %v1489_v44 }
 0x3b4   : > { %1527 = vst.msk [vmem:[%s2335_s24 + $0x10] sm:$0xf] %vm1522_vm12, %v1791_v38  ;;  %v1792_v46 = vpack.c.bf16 %v1487_v36, %v1487_v36 }
 0x3b5   : > { %1530 = vst.msk [vmem:[%s2335_s24 + $0x1c] sm:$0xf] %vm1522_vm12, %v1794_v45 }
 0x3b6   : > { %1528 = vst.msk [vmem:[%s2335_s24 + $0x14] sm:$0xf] %vm1522_vm12, %v1792_v46 }
 0x3b7   : > { %2065 = shalt.err (!%p2062_p11)
}
 0x3b8   : > { %s2066_s24 = scalar_lea.hbm %s2615_s0, 512  ;;  %s2070_s25 = scalar_lea.hbm %s2685_s9, 4096 }
 0x3b9   : > { %p2067_p12 = scmp.ne.s32.totalorder %s2615_s0, %s2066_s24  ;;  %p2071_p1 = scmp.lt.u32.totalorder %s2615_s0, %s2685_s9 }
 0x3ba   : > { %p2072_p2 = scmp.lt.u32.totalorder %s2070_s25, %s2066_s24  ;;  %p2074_p5 = scmp.lt.u32.totalorder %s2066_s24, %s2615_s0 }
 0x3bb   : > { %p2068_p13 = pnand %p2067_p12, %p2256_p3 }
 0x3bc   : > { %p2073_p4 = por %p2072_p2, %p2071_p1 }
 0x3bd   : > { %p2069_p0 = pneg %p2068_p13 }
 0x3be   : > { %p2075_p6 = por %p2074_p5, %p2073_p4 }
 0x3c0   : > { %p2076_p7 = pnand %p2075_p6, %p2069_p0 }
 0x3c2   : > { %2079 = shalt.err (!%p2076_p7)
}
 0x3c3   : > { %s2154_s1 = smov 64   ;;  %s2697_s18 = smov 4  }
 0x3c4   : > { %1938 = dma.vmem_to_hbm [thread:$0]  (%p2256_p3), %s2608_s13, 512, %s2615_s0, %s2623_s17, %s2154_s1, %s2154_s1, %s2697_s18  }
 0x3c5 PF: > { %p1944_p9 = scmp.ge.s32.totalorder %s2146_s16, 2  ;;  %s1563_s12 = sand.u32 1, %s2118_s30  }
 0x3c6   : > { %s1564_s24 = scalar_lea.sflag [#allocation4], %s1563_s12 }
 0x3c7   : > { %p1941_p10 = pnand %p1944_p9, %p2265_p8 }
 0x3c9   : > { %2113 = dma.done.wait (!%p1941_p10), %s1564_s24, 512  }
 0x3ca   : > { %2115 = vsyncadd (!%p1941_p10), %s1564_s24, 4294966784  ;;  %s22_s16 = sadd.s32 1, %s2146_s16   ;;  %s2698_s30 = smov %s2122_s10 }
 0x3cb   : > { %p19_p11 = scmp.ge.s32.totalorder %s22_s16, 10   ;;  %s2699_s10 = smov %s2126_s11 }
 0x3cc   : > { %s2700_s11 = smov %s2274_s27  ;;  %s2701_s12 = smov %s2138_s14 }
 0x3cd   : > { %s2702_s13 = smov %s2142_s15  ;;  %s2703_s14 = smov %s2706_s19 }
 0x3ce   : > { %s2704_s15 = smov %s2710_s20  ;;  %21 = sbr.rel (!%p19_p11) target bundleno = 8 (0x8), region = 106 }
 0x3d5   :  { %1569 = vsyncpa [#allocation4], 1 }
 0x3d6   :  { %1571 = vsyncpa [#allocation4 + $0x1], 1 }

</bundles_post_ra>
